<compile_context>
chip_gen: v7x
topology: tpu7x:2x2x1
jax: 0.10.0
libtpu: 0.0.40
codegen_flags: <defaults>
</compile_context>

<pallas_src>
import functools

import jax
import jax.numpy as jnp
from jax.experimental import pallas as pl
from jax.experimental.pallas import tpu as pltpu


# ----------------------------------------------------------------------------
# Pallas kernel: whole MLP stack + boundary-factor epilogue, batch-on-lane.
# ----------------------------------------------------------------------------
def drrnn_kernel(x_ref, w0_ref, b0_ref, w1_ref, b1_ref, w2_ref, b2_ref,
                 wf_ref, bf_ref, o_ref, *, compute_dtype):
    cdt = compute_dtype

    # x tile arrives transposed: (in_N, TB) with the batch on the lane axis.
    xt = x_ref[...].astype(jnp.float32)

    # torch.chunk(x, 3, 1) with in_N == 3 -> three (1, TB) lane rows.
    dx = xt[0:1, :]
    dy = xt[1:2, :]
    dz = xt[2:3, :]

    def mm(w, h):
        # Explicit compute dtype (bf16 is a valid choice on v6e/v7x); always
        # accumulate in f32 on the MXU.
        return jnp.dot(w.astype(cdt), h.astype(cdt),
                       preferred_element_type=jnp.float32)

    # stack[0] : Linear(in_N, m)   (no activation, per the PyTorch forward)
    h = mm(w0_ref[...], xt) + b0_ref[...].astype(jnp.float32)        # (m, TB)

    # stack[1..depth] : Block(m, m, m): tanh(L2(tanh(L1(h)))) + h
    depth = w1_ref.shape[0]

    def block(d, h):
        t = jnp.tanh(mm(w1_ref[d], h) + b1_ref[d].astype(jnp.float32))
        return jnp.tanh(mm(w2_ref[d], t) + b2_ref[d].astype(jnp.float32)) + h

    if depth <= 4:
        # Shallow: static unroll is fine and keeps per-block scheduling simple.
        for d in range(depth):
            h = block(d, h)
    else:
        # Deep: visible loop bounds live ranges / code size for the scheduler.
        h = jax.lax.fori_loop(0, depth, block, h, unroll=True)

    # stack[-1] : Linear(m, out_N)  ->  (out_N, TB), lane-dense.
    out = mm(wf_ref[...], h) + bf_ref[...].astype(jnp.float32)

    # boundary factor, fused:  (dx(1-dx)) * (dy(1-dy)) * (dz(1-dz))
    f = (dx * (1.0 - dx)) * (dy * (1.0 - dy)) * (dz * (1.0 - dz))
    o_ref[...] = (out * f).astype(o_ref.dtype)


# ----------------------------------------------------------------------------
# Wrapper
# ----------------------------------------------------------------------------
def _default_tile_b(N):
    # Prefer >= 2 parallel grid steps (v7x has 2 TensorCores) with the largest
    # lane-aligned tile that divides N; otherwise run a single full-batch step.
    for cand in (2048, 1024, 512, 256, 128):
        if N % cand == 0 and N // cand >= 2:
            return cand
    return N


def drrnn_forward(x, params, *, tile_b=None, compute_dtype=jnp.float32):
    N, in_N = x.shape
    assert in_N == 3, "drrnn chunks the input into exactly 3 coordinates"
    w0, b0, w1, b1, w2, b2, wf, bf = params
    m = w0.shape[0]
    out_N = wf.shape[0]
    depth = w1.shape[0]

    if tile_b is None:
        tile_b = _default_tile_b(N)
    assert N % tile_b == 0, "batch must be a multiple of tile_b"

    # Batch-on-lane layout: feed x transposed, emit output transposed.
    xt = x.T                                                   # (in_N, N)

    # Grid-invariant (whole-array) blocks for weights and biases.
    # TODO(synk): at large m/depth on v7x (64 MiB VMEM), single-buffer these
    # (pipeline_mode=pl.Buffered(1)) since their index_map is constant.
    full = lambda *shape: pl.BlockSpec(shape, lambda i: (0,) * len(shape))

    grid_spec = pltpu.PrefetchScalarGridSpec(
        num_scalar_prefetch=0,
        grid=(N // tile_b,),
        in_specs=[
            pl.BlockSpec((in_N, tile_b), lambda i: (0, i)),    # x tile (in_N, TB)
            full(m, in_N),                                     # W0   (m, in_N)
            full(m, 1),                                        # b0   (m, 1)
            full(depth, m, m),                                 # W1   per block
            full(depth, m, 1),                                 # b1
            full(depth, m, m),                                 # W2
            full(depth, m, 1),                                 # b2
            full(out_N, m),                                    # Wf   (out_N, m)
            full(out_N, 1),                                    # bf   (out_N, 1)
        ],
        out_specs=pl.BlockSpec((out_N, tile_b), lambda i: (0, i)),
    )

    flops = 2 * N * (in_N * m + 2 * depth * m * m + m * out_N) + 9 * N * out_N
    transcendentals = 2 * depth * N * m
    bytes_accessed = 4 * (N * (in_N + out_N)
                          + m * in_N + m
                          + 2 * depth * (m * m + m)
                          + out_N * m + out_N)

    out_t = pl.pallas_call(
        functools.partial(drrnn_kernel, compute_dtype=compute_dtype),
        out_shape=jax.ShapeDtypeStruct((out_N, N), x.dtype),
        grid_spec=grid_spec,
        compiler_params=pltpu.CompilerParams(
            dimension_semantics=("parallel",)),
        cost_estimate=pl.CostEstimate(
            flops=int(flops),
            transcendentals=int(transcendentals),
            bytes_accessed=int(bytes_accessed)),
    )(xt, w0, b0, w1, b1, w2, b2, wf, bf)

    return out_t.T                                             # (N, out_N)


# ----------------------------------------------------------------------------
# Deterministic parameter init (mimics nn.Linear default U(-1/sqrt(fan_in), .))
# Weights are stored PyTorch-style as (fan_out, fan_in); biases as (fan_out, 1).
# ----------------------------------------------------------------------------
def init_params(key, in_N, m, out_N, depth, dtype=jnp.float32):
    def linear(k, fan_in, fan_out):
        k1, k2 = jax.random.split(k)
        bound = 1.0 / jnp.sqrt(jnp.float32(fan_in))
        w = jax.random.uniform(k1, (fan_out, fan_in), dtype, -bound, bound)
        b = jax.random.uniform(k2, (fan_out, 1), dtype, -bound, bound)
        return w, b

    keys = jax.random.split(key, 2 + 2 * depth)
    w0, b0 = linear(keys[0], in_N, m)
    w1s, b1s, w2s, b2s = [], [], [], []
    for d in range(depth):
        w1, b1 = linear(keys[1 + 2 * d], m, m)
        w2, b2 = linear(keys[2 + 2 * d], m, m)
        w1s.append(w1); b1s.append(b1); w2s.append(w2); b2s.append(b2)
    wf, bf = linear(keys[-1], m, out_N)

    return (
        w0, b0,
        jnp.stack(w1s), jnp.stack(b1s),
        jnp.stack(w2s), jnp.stack(b2s),
        wf, bf,
    )


# ----------------------------------------------------------------------------
# Pure-JAX reference (for a sanity check against the kernel)
# ----------------------------------------------------------------------------
def drrnn_reference(x, params):
    w0, b0, w1, b1, w2, b2, wf, bf = params
    dx, dy, dz = x[:, 0:1], x[:, 1:2], x[:, 2:3]
    h = x @ w0.T + b0[:, 0]
    for d in range(w1.shape[0]):
        t = jnp.tanh(h @ w1[d].T + b1[d, :, 0])
        h = jnp.tanh(t @ w2[d].T + b2[d, :, 0]) + h
    out = h @ wf.T + bf[:, 0]
    return out * dx * dy * dz * (1 - dx) * (1 - dy) * (1 - dz)


if __name__ == "__main__":
    in_N, m, out_N, depth = 3, 32, 1, 2
    N = 256  # batch of 3D collocation points

    key = jax.random.PRNGKey(0)
    kx, kp = jax.random.split(key)
    x = jax.random.uniform(kx, (N, in_N), jnp.float32)  # points in [0, 1]^3
    params = init_params(kp, in_N, m, out_N, depth)

    out = drrnn_forward(x, params)
    out = jax.block_until_ready(out)

    ref = drrnn_reference(x, params)
    assert out.shape == (N, out_N)
    assert jnp.allclose(out, ref, atol=1e-5, rtol=1e-5), "kernel mismatch vs reference"

    print("KERNEL_OK")
</pallas_src>

<mosaic_0001>
module attributes {stable_mosaic.version = 11 : i64} {
  func.func @drrnn_kernel(%arg0: i32, %arg1: memref<3x128xf32, #tpu.memory_space<vmem>>, %arg2: memref<32x3xf32, #tpu.memory_space<vmem>>, %arg3: memref<32x1xf32, #tpu.memory_space<vmem>>, %arg4: memref<2x32x32xf32, #tpu.memory_space<vmem>>, %arg5: memref<2x32x1xf32, #tpu.memory_space<vmem>>, %arg6: memref<2x32x32xf32, #tpu.memory_space<vmem>>, %arg7: memref<2x32x1xf32, #tpu.memory_space<vmem>>, %arg8: memref<1x32xf32, #tpu.memory_space<vmem>>, %arg9: memref<1x1xf32, #tpu.memory_space<vmem>>, %arg10: memref<1x128xf32, #tpu.memory_space<vmem>>) attributes {dimension_semantics = [#tpu.dimension_semantics<parallel>], iteration_bounds = array<i64: 2>, scalar_prefetch = 0 : i64, scratch_operands = 0 : i64, tpu.core_type = #tpu.core_type<tc>, window_params = [{transform_indices = @transform_0, window_bounds = array<i64: 3, 128>}, {pipeline_mode = #tpu.pipeline_mode<synchronous>, transform_indices = @transform_1, window_bounds = array<i64: 32, 3>}, {pipeline_mode = #tpu.pipeline_mode<synchronous>, transform_indices = @transform_2, window_bounds = array<i64: 32, 1>}, {pipeline_mode = #tpu.pipeline_mode<synchronous>, transform_indices = @transform_3, window_bounds = array<i64: 2, 32, 32>}, {pipeline_mode = #tpu.pipeline_mode<synchronous>, transform_indices = @transform_4, window_bounds = array<i64: 2, 32, 1>}, {pipeline_mode = #tpu.pipeline_mode<synchronous>, transform_indices = @transform_5, window_bounds = array<i64: 2, 32, 32>}, {pipeline_mode = #tpu.pipeline_mode<synchronous>, transform_indices = @transform_6, window_bounds = array<i64: 2, 32, 1>}, {pipeline_mode = #tpu.pipeline_mode<synchronous>, transform_indices = @transform_7, window_bounds = array<i64: 1, 32>}, {pipeline_mode = #tpu.pipeline_mode<synchronous>, transform_indices = @transform_8, window_bounds = array<i64: 1, 1>}, {transform_indices = @transform_9, window_bounds = array<i64: 1, 128>}]} {
    %c0 = arith.constant 0 : index
    %c0_0 = arith.constant 0 : index
    %0 = vector.load %arg1[%c0, %c0_0] : memref<3x128xf32, #tpu.memory_space<vmem>>, vector<3x128xf32>
    %1 = vector.extract_strided_slice %0 {offsets = [0, 0], sizes = [1, 128], strides = [1, 1]} : vector<3x128xf32> to vector<1x128xf32>
    %2 = vector.extract_strided_slice %0 {offsets = [1, 0], sizes = [1, 128], strides = [1, 1]} : vector<3x128xf32> to vector<1x128xf32>
    %3 = vector.extract_strided_slice %0 {offsets = [2, 0], sizes = [1, 128], strides = [1, 1]} : vector<3x128xf32> to vector<1x128xf32>
    %c0_1 = arith.constant 0 : index
    %c0_2 = arith.constant 0 : index
    %4 = vector.load %arg2[%c0_1, %c0_2] : memref<32x3xf32, #tpu.memory_space<vmem>>, vector<32x3xf32>
    %cst = arith.constant dense<0.000000e+00> : vector<32x128xf32>
    %5 = tpu.matmul %4, %0, %cst {dimension_numbers = #tpu.dot_dimension_numbers<[1], [0], [0], [1], [0, 0, 1, 1], [], []>} : vector<32x3xf32>, vector<3x128xf32>, vector<32x128xf32> -> vector<32x128xf32>
    %c0_3 = arith.constant 0 : index
    %c0_4 = arith.constant 0 : index
    %6 = vector.load %arg3[%c0_3, %c0_4] : memref<32x1xf32, #tpu.memory_space<vmem>>, vector<32x1xf32>
    %7 = vector.broadcast %6 : vector<32x1xf32> to vector<32x128xf32>
    %8 = arith.addf %5, %7 : vector<32x128xf32>
    %c0_5 = arith.constant 0 : index
    %c0_6 = arith.constant 0 : index
    %c0_7 = arith.constant 0 : index
    %9 = vector.load %arg4[%c0_5, %c0_6, %c0_7] : memref<2x32x32xf32, #tpu.memory_space<vmem>>, vector<1x32x32xf32>
    %10 = vector.shape_cast %9 : vector<1x32x32xf32> to vector<32x32xf32>
    %cst_8 = arith.constant dense<0.000000e+00> : vector<32x128xf32>
    %11 = tpu.matmul %10, %8, %cst_8 {dimension_numbers = #tpu.dot_dimension_numbers<[1], [0], [0], [1], [0, 0, 1, 1], [], []>} : vector<32x32xf32>, vector<32x128xf32>, vector<32x128xf32> -> vector<32x128xf32>
    %c0_9 = arith.constant 0 : index
    %c0_10 = arith.constant 0 : index
    %c0_11 = arith.constant 0 : index
    %12 = vector.load %arg5[%c0_9, %c0_10, %c0_11] : memref<2x32x1xf32, #tpu.memory_space<vmem>>, vector<1x32x1xf32>
    %13 = vector.shape_cast %12 : vector<1x32x1xf32> to vector<32x1xf32>
    %14 = vector.broadcast %13 : vector<32x1xf32> to vector<32x128xf32>
    %15 = arith.addf %11, %14 : vector<32x128xf32>
    %16 = math.tanh %15 : vector<32x128xf32>
    %c0_12 = arith.constant 0 : index
    %c0_13 = arith.constant 0 : index
    %c0_14 = arith.constant 0 : index
    %17 = vector.load %arg6[%c0_12, %c0_13, %c0_14] : memref<2x32x32xf32, #tpu.memory_space<vmem>>, vector<1x32x32xf32>
    %18 = vector.shape_cast %17 : vector<1x32x32xf32> to vector<32x32xf32>
    %cst_15 = arith.constant dense<0.000000e+00> : vector<32x128xf32>
    %19 = tpu.matmul %18, %16, %cst_15 {dimension_numbers = #tpu.dot_dimension_numbers<[1], [0], [0], [1], [0, 0, 1, 1], [], []>} : vector<32x32xf32>, vector<32x128xf32>, vector<32x128xf32> -> vector<32x128xf32>
    %c0_16 = arith.constant 0 : index
    %c0_17 = arith.constant 0 : index
    %c0_18 = arith.constant 0 : index
    %20 = vector.load %arg7[%c0_16, %c0_17, %c0_18] : memref<2x32x1xf32, #tpu.memory_space<vmem>>, vector<1x32x1xf32>
    %21 = vector.shape_cast %20 : vector<1x32x1xf32> to vector<32x1xf32>
    %22 = vector.broadcast %21 : vector<32x1xf32> to vector<32x128xf32>
    %23 = arith.addf %19, %22 : vector<32x128xf32>
    %24 = math.tanh %23 : vector<32x128xf32>
    %25 = arith.addf %24, %8 : vector<32x128xf32>
    %c1 = arith.constant 1 : index
    %c0_19 = arith.constant 0 : index
    %c0_20 = arith.constant 0 : index
    %26 = vector.load %arg4[%c1, %c0_19, %c0_20] : memref<2x32x32xf32, #tpu.memory_space<vmem>>, vector<1x32x32xf32>
    %27 = vector.shape_cast %26 : vector<1x32x32xf32> to vector<32x32xf32>
    %cst_21 = arith.constant dense<0.000000e+00> : vector<32x128xf32>
    %28 = tpu.matmul %27, %25, %cst_21 {dimension_numbers = #tpu.dot_dimension_numbers<[1], [0], [0], [1], [0, 0, 1, 1], [], []>} : vector<32x32xf32>, vector<32x128xf32>, vector<32x128xf32> -> vector<32x128xf32>
    %c1_22 = arith.constant 1 : index
    %c0_23 = arith.constant 0 : index
    %c0_24 = arith.constant 0 : index
    %29 = vector.load %arg5[%c1_22, %c0_23, %c0_24] : memref<2x32x1xf32, #tpu.memory_space<vmem>>, vector<1x32x1xf32>
    %30 = vector.shape_cast %29 : vector<1x32x1xf32> to vector<32x1xf32>
    %31 = vector.broadcast %30 : vector<32x1xf32> to vector<32x128xf32>
    %32 = arith.addf %28, %31 : vector<32x128xf32>
    %33 = math.tanh %32 : vector<32x128xf32>
    %c1_25 = arith.constant 1 : index
    %c0_26 = arith.constant 0 : index
    %c0_27 = arith.constant 0 : index
    %34 = vector.load %arg6[%c1_25, %c0_26, %c0_27] : memref<2x32x32xf32, #tpu.memory_space<vmem>>, vector<1x32x32xf32>
    %35 = vector.shape_cast %34 : vector<1x32x32xf32> to vector<32x32xf32>
    %cst_28 = arith.constant dense<0.000000e+00> : vector<32x128xf32>
    %36 = tpu.matmul %35, %33, %cst_28 {dimension_numbers = #tpu.dot_dimension_numbers<[1], [0], [0], [1], [0, 0, 1, 1], [], []>} : vector<32x32xf32>, vector<32x128xf32>, vector<32x128xf32> -> vector<32x128xf32>
    %c1_29 = arith.constant 1 : index
    %c0_30 = arith.constant 0 : index
    %c0_31 = arith.constant 0 : index
    %37 = vector.load %arg7[%c1_29, %c0_30, %c0_31] : memref<2x32x1xf32, #tpu.memory_space<vmem>>, vector<1x32x1xf32>
    %38 = vector.shape_cast %37 : vector<1x32x1xf32> to vector<32x1xf32>
    %39 = vector.broadcast %38 : vector<32x1xf32> to vector<32x128xf32>
    %40 = arith.addf %36, %39 : vector<32x128xf32>
    %41 = math.tanh %40 : vector<32x128xf32>
    %42 = arith.addf %41, %25 : vector<32x128xf32>
    %c0_32 = arith.constant 0 : index
    %c0_33 = arith.constant 0 : index
    %43 = vector.load %arg8[%c0_32, %c0_33] : memref<1x32xf32, #tpu.memory_space<vmem>>, vector<1x32xf32>
    %cst_34 = arith.constant dense<0.000000e+00> : vector<1x128xf32>
    %44 = tpu.matmul %43, %42, %cst_34 {dimension_numbers = #tpu.dot_dimension_numbers<[1], [0], [0], [1], [0, 0, 1, 1], [], []>} : vector<1x32xf32>, vector<32x128xf32>, vector<1x128xf32> -> vector<1x128xf32>
    %c0_35 = arith.constant 0 : index
    %c0_36 = arith.constant 0 : index
    %45 = vector.load %arg9[%c0_35, %c0_36] : memref<1x1xf32, #tpu.memory_space<vmem>>, vector<1x1xf32>
    %46 = vector.broadcast %45 : vector<1x1xf32> to vector<1x128xf32>
    %47 = arith.addf %44, %46 : vector<1x128xf32>
    %cst_37 = arith.constant 1.000000e+00 : f32
    %48 = vector.broadcast %cst_37 : f32 to vector<1x128xf32>
    %49 = arith.subf %48, %1 : vector<1x128xf32>
    %50 = arith.mulf %1, %49 : vector<1x128xf32>
    %cst_38 = arith.constant 1.000000e+00 : f32
    %51 = vector.broadcast %cst_38 : f32 to vector<1x128xf32>
    %52 = arith.subf %51, %2 : vector<1x128xf32>
    %53 = arith.mulf %2, %52 : vector<1x128xf32>
    %54 = arith.mulf %50, %53 : vector<1x128xf32>
    %cst_39 = arith.constant 1.000000e+00 : f32
    %55 = vector.broadcast %cst_39 : f32 to vector<1x128xf32>
    %56 = arith.subf %55, %3 : vector<1x128xf32>
    %57 = arith.mulf %3, %56 : vector<1x128xf32>
    %58 = arith.mulf %54, %57 : vector<1x128xf32>
    %59 = arith.mulf %47, %58 : vector<1x128xf32>
    %c0_40 = arith.constant 0 : index
    %c0_41 = arith.constant 0 : index
    %60 = vector.load %arg10[%c0_40, %c0_41] : memref<1x128xf32, #tpu.memory_space<vmem>>, vector<1x128xf32>
    tpu.vector_store %arg10[%c0_40, %c0_41], %59 {strides = array<i32>} : memref<1x128xf32, #tpu.memory_space<vmem>>, vector<1x128xf32>,
    return
  }
  func.func @transform_0(%arg0: i32) -> (i32, i32) {
    %c0_i32 = arith.constant 0 : i32
    %c0_i32_0 = arith.constant 0 : i32
    return %c0_i32, %arg0 : i32, i32
  }
  func.func @transform_1(%arg0: i32) -> (i32, i32) {
    %c0_i32 = arith.constant 0 : i32
    %c0_i32_0 = arith.constant 0 : i32
    %c0_i32_1 = arith.constant 0 : i32
    return %c0_i32, %c0_i32_0 : i32, i32
  }
  func.func @transform_2(%arg0: i32) -> (i32, i32) {
    %c0_i32 = arith.constant 0 : i32
    %c0_i32_0 = arith.constant 0 : i32
    %c0_i32_1 = arith.constant 0 : i32
    return %c0_i32, %c0_i32_0 : i32, i32
  }
  func.func @transform_3(%arg0: i32) -> (i32, i32, i32) {
    %c0_i32 = arith.constant 0 : i32
    %c0_i32_0 = arith.constant 0 : i32
    %c0_i32_1 = arith.constant 0 : i32
    %c0_i32_2 = arith.constant 0 : i32
    return %c0_i32, %c0_i32_0, %c0_i32_1 : i32, i32, i32
  }
  func.func @transform_4(%arg0: i32) -> (i32, i32, i32) {
    %c0_i32 = arith.constant 0 : i32
    %c0_i32_0 = arith.constant 0 : i32
    %c0_i32_1 = arith.constant 0 : i32
    %c0_i32_2 = arith.constant 0 : i32
    return %c0_i32, %c0_i32_0, %c0_i32_1 : i32, i32, i32
  }
  func.func @transform_5(%arg0: i32) -> (i32, i32, i32) {
    %c0_i32 = arith.constant 0 : i32
    %c0_i32_0 = arith.constant 0 : i32
    %c0_i32_1 = arith.constant 0 : i32
    %c0_i32_2 = arith.constant 0 : i32
    return %c0_i32, %c0_i32_0, %c0_i32_1 : i32, i32, i32
  }
  func.func @transform_6(%arg0: i32) -> (i32, i32, i32) {
    %c0_i32 = arith.constant 0 : i32
    %c0_i32_0 = arith.constant 0 : i32
    %c0_i32_1 = arith.constant 0 : i32
    %c0_i32_2 = arith.constant 0 : i32
    return %c0_i32, %c0_i32_0, %c0_i32_1 : i32, i32, i32
  }
  func.func @transform_7(%arg0: i32) -> (i32, i32) {
    %c0_i32 = arith.constant 0 : i32
    %c0_i32_0 = arith.constant 0 : i32
    %c0_i32_1 = arith.constant 0 : i32
    return %c0_i32, %c0_i32_0 : i32, i32
  }
  func.func @transform_8(%arg0: i32) -> (i32, i32) {
    %c0_i32 = arith.constant 0 : i32
    %c0_i32_0 = arith.constant 0 : i32
    %c0_i32_1 = arith.constant 0 : i32
    return %c0_i32, %c0_i32_0 : i32, i32
  }
  func.func @transform_9(%arg0: i32) -> (i32, i32) {
    %c0_i32 = arith.constant 0 : i32
    %c0_i32_0 = arith.constant 0 : i32
    return %c0_i32, %arg0 : i32, i32
  }
}

</mosaic_0001>

<bundles_post_ra>
// kernel: tpu_custom_call.1
= control target key start
LH: loop header
LB: loop body
LE: loop exit
PB: predicated region body
PF: predicated region fallthrough
CT: control target
= control target key end

     0   :  { %s1834_s0 = inlined_call_operand.vmem [shape: f32[3,256], index: 0, kind: input, shape index: {}]   ;;  %s1835_s1 = inlined_call_operand.vmem [shape: f32[32,3], index: 1, kind: input, shape index: {}]   ;;  %s1836_s2 = inlined_call_operand.vmem [shape: f32[32,1], index: 2, kind: input, shape index: {}]   ;;  %s1837_s3 = inlined_call_operand.vmem [shape: f32[2,32,32], index: 3, kind: input, shape index: {}]   ;;  %s1838_s4 = inlined_call_operand.vmem [shape: f32[2,32,1], index: 4, kind: input, shape index: {}]   ;;  %s1839_s5 = inlined_call_operand.vmem [shape: f32[2,32,32], index: 5, kind: input, shape index: {}]   ;;  %s1840_s6 = inlined_call_operand.vmem [shape: f32[2,32,1], index: 6, kind: input, shape index: {}]   ;;  %s1841_s7 = inlined_call_operand.vmem [shape: f32[1,32], index: 7, kind: input, shape index: {}]   ;;  %s1842_s8 = inlined_call_operand.<no memory space> [shape: f32[1,1], index: 8, kind: input, shape index: {}]   ;;  %s1843_s9 = inlined_call_operand.hbm [shape: f32[1,256], index: 9, kind: output, shape index: {}]  }
   0x1   :  { %v14_v0 = vstv %s1842_s8 }
   0x2   :  { %15 = vst [vmem:[#allocation2] sm:$0x1] %v14_v0 }
   0x3   :  { %16 = vsyncpa [#allocation4], 0 }
   0x4   :  { %18 = vsyncpa [#allocation4 + $0x1], 0  ;;  %s1552_s11 = smov 0   ;;  %s1554_s12 = smov 0  }
   0x5   :  { %s1556_s13 = smov 0   ;;  %s1558_s14 = smov 0  }
   0x6 LB: > { %s1573_s8 = sadd.s32 4294967295, %s1492_s14   ;;  %s1152_s15 = sadd.s32 4294967294, %s1492_s14   ;;  %s1492_s14 = sphi %s1558_s14, %s1849_s14   ;;  %s1488_s13 = sphi %s1556_s13, %s1848_s13   ;;  %s1484_s12 = sphi %s1554_s12, %s1847_s12   ;;  %s1480_s11 = sphi %s1552_s11, %s1846_s11  }
   0x7   : > { %s1577_s16 = sadd.s32 1, %s1492_s14   ;;  %s225_s17 = sadd.s32 1, %s1488_s13 }
   0x8   : > { %s222_s18 = ssub.s32 %s1492_s14, %s1577_s16  ;;  %p235_p0 = scmp.ne.s32.totalorder %s1488_s13, %s1484_s12 }
   0x9   : > { %p223_p1 = scmp.eq.s32.totalorder %s222_s18, 0  ;;  %p236_p2 = scmp.eq.s32.totalorder %s1573_s8, 1 }
   0xa   : > { %p241_p3 = scmp.ne.s32.totalorder %s1484_s12, %s1480_s11  ;;  %p242_p4 = scmp.eq.s32.totalorder %s1152_s15, 1 }
   0xb   : > { %s1588_s19 = scalar_select %p223_p1, %s1488_s13, %s225_s17  }
   0xc   : > { %p1590_p5 = por %p236_p2, %p235_p0  ;;  %p1594_p6 = por %p242_p4, %p241_p3 }
   0xd   : > { %p1155_p7 = scmp.ge.s32.totalorder %s1492_s14, 1  ;;  %p291_p8 = scmp.lt.s32.totalorder %s1492_s14, 3 }
   0xf   : > { %p292_p9 = pnand %p1155_p7, %p291_p8 }
  0x10   : > { %p325_p10 = scmp.lt.s32.totalorder (!%p292_p9), %s1573_s8, 1  ;;  %v330_v1 = vld [vmem:[%s1835_s1] sm:$0xff] (!%p292_p9)  ;;  %vm358_vm0 = vcmask (!%p292_p9), 23552   ;;  %v1494_v3 = vmov (!%p292_p9), 0   ;;  %v336_v4 = vld [vmem:[%s1836_s2 + $0x10] sm:$0xff] (!%p292_p9)  ;;  %vm371_vm1 = vcmask (!%p292_p9), 1042432  }
  0x11   : > { %295 = sbr.rel (%p292_p9) target bundleno = 1433 (0x599), region = 56  ;;  %1242 = vmatprep.mubr.msk.f32.mxu0 (!%p292_p9), %vm358_vm0, %v330_v1  ;;  %v334_v2 = vld [vmem:[%s1836_s2] sm:$0xff] (!%p292_p9)  ;;  %1396 = vset.pattern.permute.xlu0 (!%p292_p9), %v1494_v3  ;;  %v335_v5 = vld [vmem:[%s1836_s2 + $0x8] sm:$0xff] (!%p292_p9)  ;;  %v337_v6 = vld [vmem:[%s1836_s2 + $0x18] sm:$0xff] (!%p292_p9)  ;;  %vm488_vm2 = vcmask (!%p292_p9), 261120   ;;  %vm1496_vm3 = vmmov (!%p292_p9), 0  }
  0x12   : > { %1397 = vset.pattern.permute.xlu1 (!%p292_p9), %v1494_v3  ;;  %340 = vperm.xlu0 (!%p292_p9), %1396, %v334_v2   ;;  %v331_v8 = vld [vmem:[%s1835_s1 + $0x8] sm:$0xff] (!%p292_p9)  ;;  %v332_v9 = vld [vmem:[%s1835_s1 + $0x10] sm:$0xff] (!%p292_p9)  ;;  %v464_v10 = vld [vmem:[%s1838_s4] sm:$0xff] (!%p292_p9)  ;;  %s323_s10 = sand.u32 (!%p292_p9), 1, %s1484_s12   ;;  %s1195_s15 = sshll.u32 (!%p292_p9), %s1573_s8, 4 }
  0x13   : > { %350 = vperm.xlu1 (!%p292_p9), %1397, %v336_v4   ;;  %v465_v11 = vld [vmem:[%s1838_s4 + $0x8] sm:$0xff] (!%p292_p9)  ;;  %v333_v12 = vld [vmem:[%s1835_s1 + $0x18] sm:$0xff] (!%p292_p9)  ;;  %v466_v13 = vld [vmem:[%s1838_s4 + $0x10] sm:$0xff] (!%p292_p9)  ;;  %s324_s17 = scalar_lea.vmem (!%p292_p9), [#allocation3], %s323_s10  ;;  %s1792_s24 = scalar_lea.hbm (!%p292_p9), %s1843_s9, %s1195_s15 }
  0x14   : > { %v467_v14 = vld [vmem:[%s1838_s4 + $0x18] sm:$0xff] (!%p292_p9)  ;;  %v594_v15 = vld [vmem:[%s1840_s6] sm:$0xff] (!%p292_p9)  ;;  %v595_v16 = vld [vmem:[%s1840_s6 + $0x8] sm:$0xff] (!%p292_p9)  ;;  %s1085_s25 = scalar_lea.sflag (!%p292_p9), [#allocation4], %s323_s10 }
  0x15   : > { %v596_v17 = vld [vmem:[%s1840_s6 + $0x10] sm:$0xff] (!%p292_p9)  ;;  %v597_v18 = vld [vmem:[%s1840_s6 + $0x18] sm:$0xff] (!%p292_p9)  ;;  %v1174_v19 = vld [vmem:[%s1838_s4 + $0x20] sm:$0xff] (!%p292_p9) }
  0x16   : > { %345 = vperm.xlu0 (!%p292_p9), %1396, %v335_v5   ;;  %v1175_v20 = vld [vmem:[%s1838_s4 + $0x28] sm:$0xff] (!%p292_p9)  ;;  %v1176_v21 = vld [vmem:[%s1838_s4 + $0x30] sm:$0xff] (!%p292_p9)  ;;  %v1177_v22 = vld [vmem:[%s1838_s4 + $0x38] sm:$0xff] (!%p292_p9) }
  0x17   : > { %355 = vperm.xlu1 (!%p292_p9), %1397, %v337_v6   ;;  %v1186_v23 = vld [vmem:[%s1840_s6 + $0x20] sm:$0xff] (!%p292_p9)  ;;  %v1187_v24 = vld [vmem:[%s1840_s6 + $0x28] sm:$0xff] (!%p292_p9)  ;;  %v1188_v25 = vld [vmem:[%s1840_s6 + $0x30] sm:$0xff] (!%p292_p9) }
  0x18   : > { %s326_s26 = scalar_select %p325_p10, %s1573_s8, 1  ;;  %v1189_v26 = vld [vmem:[%s1840_s6 + $0x38] sm:$0xff]  ;;  %v990_v27 = vld [vmem:[#allocation2] sm:$0x1]  ;;  %v461_v43 = vld [vmem:[%s1837_s3 + $0x8] sm:$0xff] }
  0x19   : > { %v460_v28 = vld [vmem:[%s1837_s3] sm:$0xff]  ;;  %v462_v44 = vld [vmem:[%s1837_s3 + $0x10] sm:$0xff]  ;;  %v463_v45 = vld [vmem:[%s1837_s3 + $0x18] sm:$0xff]  ;;  %s1498_s8 = smov [#allocation3]  }
  0x1a   : > { %s1156_s29 = sshll.u32 %s326_s26, 2  ;;  %470 = vperm.xlu0 %1396, %v464_v10   ;;  %1256 = vmatprep.mubr.msk.f32.mxu1 %vm488_vm2, %v460_v28  ;;  %v590_v46 = vld [vmem:[%s1839_s5] sm:$0xff]  ;;  %v591_v1 = vld [vmem:[%s1839_s5 + $0x8] sm:$0xff]  ;;  %v592_v2 = vld [vmem:[%s1839_s5 + $0x10] sm:$0xff]  ;;  %s1434_s27 = sshll.u32 %s1498_s8, 4  ;;  %s1435_s27 = int_to_ptr.vmem [resolvable:$false] %s1434_s27 }
  0x1b   : > { %s328_s18 = scalar_lea.vmem %s1834_s0, %s1156_s29  ;;  %475 = vperm.xlu1 %1397, %v465_v11   ;;  %v593_v3 = vld [vmem:[%s1839_s5 + $0x18] sm:$0xff]  ;;  %v1170_v4 = vld [vmem:[%s1837_s3 + $0x20] sm:$0xff]  ;;  %v1171_v28 = vld [vmem:[%s1837_s3 + $0x28] sm:$0xff]  ;;  %s1436_s28 = scalar_lea.vmem %s1435_s27, 32 }
  0x1c   : > { %v1621_v7 = vld [vmem:[%s328_s18] sm:$0x7]  ;;  %s1097_s18 = sshll.u32 %s324_s17, 4  ;;  %s1794_s18 = int_to_ptr.vmem [resolvable:$true] %s1097_s18 }
  0x1d   : > { %1240 = vmatprep.subr.msk.mxu0 %vm371_vm1, %v1621_v7  ;;  %s1430_s26 = scalar_lea.vmem %s1794_s18, 16  ;;  %p1437_p0 = scmp.lt.s32.totalorder %s1794_s18, %s1435_s27 }
  0x1e   : > { %1241 = vmatpush3.msk.msra.mxu0 %vm371_vm1, %v1621_v7  ;;  %480 = vperm.xlu0 %1396, %v466_v13   ;;  %p1431_p11 = scmp.ne.s32.totalorder %s1794_s18, %s1430_s26  ;;  %p1438_p1 = scmp.lt.s32.totalorder %s1436_s28, %s1430_s26 }
  0x1f   : > { %1243 = vmatmul.mubr.msk.f32.vlgmr.msra.gmra.mrb[0].mxu0 %vm358_vm0, %v331_v8  ;;  %485 = vperm.xlu1 %1397, %v467_v14  }
  0x20   : > { %1245 = vmatprep.mubr.msk.f32.mxu0 %vm358_vm0, %v332_v9  ;;  %p1432_p12 = pnand %p1431_p11, %p1590_p5  ;;  %p1439_p2 = por %p1438_p1, %p1437_p0 }
  0x22   : > { %600 = vperm.xlu0 %1396, %v594_v15   ;;  %p1433_p13 = pneg %p1432_p12 }
  0x23   : > { %1246 = vmatmul.mubr.msk.f32.gmra.mrb[2].mxu0 %vm358_vm0, %v333_v12  ;;  %605 = vperm.xlu1 %1397, %v595_v16  }
  0x24   : > { %1270 = vmatprep.mubr.msk.f32.mxu0 %vm488_vm2, %v590_v46  ;;  %p1440_p3 = pnand %p1439_p2, %p1433_p13 }
  0x26   : > { %610 = vperm.xlu0 %1396, %v596_v17  }
  0x27   : > { %615 = vperm.xlu1 %1397, %v597_v18  }
  0x2a   : > { %735 = vperm.xlu0 %1396, %v1174_v19  }
  0x2b   : > { %740 = vperm.xlu1 %1397, %v1175_v20  }
  0x2e   : > { %745 = vperm.xlu0 %1396, %v1176_v21  }
  0x2f   : > { %750 = vperm.xlu1 %1397, %v1177_v22  }
  0x32   : > { %866 = vperm.xlu0 %1396, %v1186_v23  }
  0x33   : > { %871 = vperm.xlu1 %1397, %v1187_v24  }
  0x36   : > { %876 = vperm.xlu0 %1396, %v1188_v25  }
  0x37   : > { %881 = vperm.xlu1 %1397, %v1189_v26  }
  0x3a   : > { %993 = vperm.xlu0 %1396, %v990_v27  }
  0x91   : > { %v341_v29 = vpop.permute.xlu0 %340 }
  0x92   : > { %v351_v30 = vpop.permute.xlu1 %350 }
  0x95   : > { %v346_v31 = vpop.permute.xlu0 %345 }
  0x96   : > { %v356_v36 = vpop.permute.xlu1 %355 }
  0x99   : > { %v471_v48 = vpop.permute.xlu0 %470 }
  0x9a   : > { %v476_v47 = vpop.permute.xlu1 %475 }
  0x9d   : > { %v481_v55 = vpop.permute.xlu0 %480 }
  0x9e   : > { %v486_v53 = vpop.permute.xlu1 %485 }
  0xa1   : > { %v601_v6 = vpop.permute.xlu0 %600 }
  0xa2   : > { %v606_v5 = vpop.permute.xlu1 %605 }
  0xa5   : > { %v611_v14 = vpop.permute.xlu0 %610 }
  0xa6   : > { %v616_v12 = vpop.permute.xlu1 %615 }
  0xf2   : > { %v1244_v32 = vpop.f32.mrb[0].mxu0 }
  0xf3   : > { %v1689_v33 = vadd.f32 %v1244_v32, %v346_v31  ;;  %v441_v34 = vpop.f32.mrb[1].mxu0  ;;  %v1182_v31 = vld [vmem:[%s1839_s5 + $0x20] sm:$0xff]  ;;  %v741_v32 = vpop.permute.xlu1 %740 }
  0xf4   : > { %v1691_v35 = vadd.f32 %v441_v34, %v341_v29  ;;  %v1172_v29 = vld [vmem:[%s1837_s3 + $0x30] sm:$0xff] }
  0xf6   : > { %v1247_v37 = vpop.f32.mrb[2].mxu0  ;;  %v1315_v38 = vpack.c.bf16 %v1689_v33, %v1691_v35 }
  0xf7   : > { %v1695_v39 = vadd.f32 %v1247_v37, %v356_v36  ;;  %v451_v40 = vpop.f32.mrb[3].mxu0 }
  0xf8   : > { %v1697_v41 = vadd.f32 %v451_v40, %v351_v30  ;;  %1316 = vmatprep.subr.bf16.mxu1 %v1315_v38  ;;  %v1173_v30 = vld [vmem:[%s1837_s3 + $0x38] sm:$0xff] }
  0xf9   : > { %1318 = vmatpush3.bf16.msra.mxu1 %v1315_v38  ;;  %v751_v38 = vpop.permute.xlu1 %750 }
  0xfa   : > { %v1319_v42 = vpack.c.bf16 %v1695_v39, %v1697_v41 }
  0xfc   : > { %1320 = vmatprep.subr.bf16.mxu1 %v1319_v42 }
  0xfd   : > { %1322 = vmatpush3.bf16.msra.mxu1 %v1319_v42 }
 0x100   : > { %1257 = vmatmul.mubr.msk.f32.vlgmr.msra.gmra.mrb[0].mxu1 %vm488_vm2, %v461_v43 }
 0x101   : > { %1259 = vmatprep.mubr.msk.f32.mxu1 %vm488_vm2, %v462_v44 }
 0x104   : > { %1260 = vmatmul.mubr.msk.f32.gmra.mrb[2].mxu1 %vm488_vm2, %v463_v45 }
 0x105   : > { %1284 = vmatprep.mubr.msk.f32.mxu1 %vm488_vm2, %v1170_v4 }
 0x1d3   : > { %v1258_v49 = vpop.f32.mrb[0].mxu1 }
 0x1d4   : > { %v573_v50 = vadd.f32 %v1258_v49, %v476_v47  ;;  %v567_v51 = vpop.f32.mrb[1].mxu1 }
 0x1d5   : > { %v568_v52 = vadd.f32 %v567_v51, %v471_v48  ;;  %v1184_v51 = vld [vmem:[%s1839_s5 + $0x30] sm:$0xff] }
 0x1d6   : > { %1398 = vtanh.f32 %v573_v50  ;;  %v1183_v50 = vld [vmem:[%s1839_s5 + $0x28] sm:$0xff] }
 0x1d7   : > { %1400 = vtanh.f32 %v568_v52  ;;  %v1261_v54 = vpop.f32.mrb[2].mxu1  ;;  %v1185_v52 = vld [vmem:[%s1839_s5 + $0x38] sm:$0xff] }
 0x1d8   : > { %v583_v56 = vadd.f32 %v1261_v54, %v486_v53  ;;  %v577_v57 = vpop.f32.mrb[3].mxu1  ;;  %v1495_v53 = vmov 0.0|0.0   ;;  %v1497_v54 = vmov 0.0  }
 0x1d9   : > { %v578_v58 = vadd.f32 %v577_v57, %v481_v55  ;;  %v872_v55 = vpop.permute.xlu1 %871 }
 0x1da   : > { %1402 = vtanh.f32 %v583_v56 }
 0x1db   : > { %1404 = vtanh.f32 %v578_v58 }
 0x1e0   : > { %v1399_v59 = vpop.eup %1398 }
 0x1e1   : > { %v1401_v60 = vpop.eup %1400 }
 0x1e2   : > { %v1323_v61 = vpack.c.bf16 %v1399_v59, %v1401_v60 }
 0x1e4   : > { %v1403_v62 = vpop.eup %1402  ;;  %1324 = vmatprep.subr.bf16.mxu0 %v1323_v61 }
 0x1e5   : > { %v1405_v63 = vpop.eup %1404  ;;  %1326 = vmatpush3.bf16.msra.mxu0 %v1323_v61  ;;  %v882_v61 = vpop.permute.xlu1 %881 }
 0x1e6   : > { %v1327_v0 = vpack.c.bf16 %v1403_v62, %v1405_v63 }
 0x1e8   : > { %1328 = vmatprep.subr.bf16.mxu0 %v1327_v0 }
 0x1e9   : > { %1330 = vmatpush3.bf16.msra.mxu0 %v1327_v0 }
 0x1ec   : > { %1271 = vmatmul.mubr.msk.f32.vlgmr.msra.gmra.mrb[4].mxu0 %vm488_vm2, %v591_v1 }
 0x1ed   : > { %1273 = vmatprep.mubr.msk.f32.mxu0 %vm488_vm2, %v592_v2 }
 0x1f0   : > { %1274 = vmatmul.mubr.msk.f32.gmra.mrb[6].mxu0 %vm488_vm2, %v593_v3 }
 0x1f1   : > { %1298 = vmatprep.mubr.msk.f32.mxu0 %vm488_vm2, %v1182_v31 }
 0x2bf   : > { %v1272_v8 = vpop.f32.mrb[4].mxu0 }
 0x2c0   : > { %v702_v9 = vadd.f32 %v1272_v8, %v606_v5  ;;  %v696_v10 = vpop.f32.mrb[5].mxu0 }
 0x2c1   : > { %v697_v11 = vadd.f32 %v696_v10, %v601_v6 }
 0x2c2   : > { %1406 = vtanh.f32 %v702_v9 }
 0x2c3   : > { %1408 = vtanh.f32 %v697_v11  ;;  %v1275_v13 = vpop.f32.mrb[6].mxu0 }
 0x2c4   : > { %v712_v15 = vadd.f32 %v1275_v13, %v616_v12  ;;  %v706_v16 = vpop.f32.mrb[7].mxu0 }
 0x2c5   : > { %v707_v17 = vadd.f32 %v706_v16, %v611_v14  ;;  %v989_v14 = vld [vmem:[%s1841_s7] sm:$0x1] }
 0x2c6   : > { %1410 = vtanh.f32 %v712_v15  ;;  %v1073_v15 = vsub.f32 1.0, %v1621_v7 }
 0x2c7   : > { %1412 = vtanh.f32 %v707_v17  ;;  %v996_v17 = vlaneseq }
 0x2c8   : > { %v1074_v16 = vmul.f32 %v1073_v15, %v1621_v7 }
 0x2cc   : > { %v1407_v18 = vpop.eup %1406 }
 0x2cd   : > { %v1409_v19 = vpop.eup %1408  ;;  %v1734_v20 = vadd.f32 %v1407_v18, %v1689_v33  ;;  %v736_v33 = vpop.permute.xlu0 %735  ;;  %v997_v18 = vshrl.u32 %v996_v17, 7 }
 0x2ce   : > { %v1737_v21 = vadd.f32 %v1409_v19, %v1691_v35  ;;  %v1076_v19 = vrot.slane %v1074_v16, 1 }
 0x2d0   : > { %v1411_v22 = vpop.eup %1410  ;;  %v1331_v23 = vpack.c.bf16 %v1734_v20, %v1737_v21 }
 0x2d1   : > { %v1413_v24 = vpop.eup %1412  ;;  %v1742_v25 = vadd.f32 %v1411_v22, %v1695_v39  ;;  %v746_v40 = vpop.permute.xlu0 %745  ;;  %v1079_v22 = vrot.slane %v1074_v16, 2 }
 0x2d2   : > { %1332 = vmatprep.subr.bf16.mxu1 %v1331_v23  ;;  %v1745_v26 = vadd.f32 %v1413_v24, %v1697_v41 }
 0x2d3   : > { %1334 = vmatpush3.bf16.msra.mxu1 %v1331_v23 }
 0x2d4   : > { %v1335_v27 = vpack.c.bf16 %v1742_v25, %v1745_v26 }
 0x2d5   : > { %v867_v56 = vpop.permute.xlu0 %866 }
 0x2d6   : > { %1336 = vmatprep.subr.bf16.mxu1 %v1335_v27 }
 0x2d7   : > { %1338 = vmatpush3.bf16.msra.mxu1 %v1335_v27 }
 0x2d8   : > { %1347 = vmatprep.subr.bf16.mxu1 %v1495_v53 }
 0x2d9   : > { %v877_v63 = vpop.permute.xlu0 %876 }
 0x2da   : > { %1285 = vmatmul.mubr.msk.f32.vlgmr.msra.gmra.mrb[4].mxu1 %vm488_vm2, %v1171_v28 }
 0x2db   : > { %1287 = vmatprep.mubr.msk.f32.mxu1 %vm488_vm2, %v1172_v29 }
 0x2dd   : > { %v994_v23 = vpop.permute.xlu0 %993 }
 0x2de   : > { %1288 = vmatmul.mubr.msk.f32.gmra.mrb[6].mxu1 %vm488_vm2, %v1173_v30 }
 0x2df   : > { %1312 = vmatprep.mubr.msk.f32.mxu1 %vm1496_vm3, %v1497_v54 }
 0x3ad   : > { %v1286_v34 = vpop.f32.mrb[4].mxu1 }
 0x3ae   : > { %v837_v35 = vadd.f32 %v1286_v34, %v741_v32  ;;  %v831_v36 = vpop.f32.mrb[5].mxu1 }
 0x3af   : > { %v832_v37 = vadd.f32 %v831_v36, %v736_v33 }
 0x3b0   : > { %1414 = vtanh.f32 %v837_v35 }
 0x3b1   : > { %1416 = vtanh.f32 %v832_v37  ;;  %v1289_v39 = vpop.f32.mrb[6].mxu1 }
 0x3b2   : > { %v847_v41 = vadd.f32 %v1289_v39, %v751_v38  ;;  %v841_v42 = vpop.f32.mrb[7].mxu1 }
 0x3b3   : > { %v842_v43 = vadd.f32 %v841_v42, %v746_v40 }
 0x3b4   : > { %1418 = vtanh.f32 %v847_v41 }
 0x3b5   : > { %1420 = vtanh.f32 %v842_v43 }
 0x3ba   : > { %v1415_v44 = vpop.eup %1414 }
 0x3bb   : > { %v1417_v45 = vpop.eup %1416 }
 0x3bc   : > { %v1339_v46 = vpack.c.bf16 %v1415_v44, %v1417_v45 }
 0x3be   : > { %v1419_v47 = vpop.eup %1418  ;;  %1340 = vmatprep.subr.bf16.mxu0 %v1339_v46 }
 0x3bf   : > { %v1421_v48 = vpop.eup %1420  ;;  %1342 = vmatpush3.bf16.msra.mxu0 %v1339_v46 }
 0x3c0   : > { %v1343_v49 = vpack.c.bf16 %v1419_v47, %v1421_v48 }
 0x3c2   : > { %1344 = vmatprep.subr.bf16.mxu0 %v1343_v49 }
 0x3c3   : > { %1346 = vmatpush3.bf16.msra.mxu0 %v1343_v49 }
 0x3c6   : > { %1299 = vmatmul.mubr.msk.f32.vlgmr.msra.gmra.mrb[8].mxu0 %vm488_vm2, %v1183_v50 }
 0x3c7   : > { %1301 = vmatprep.mubr.msk.f32.mxu0 %vm488_vm2, %v1184_v51 }
 0x3ca   : > { %1302 = vmatmul.mubr.msk.f32.gmra.mrb[10].mxu0 %vm488_vm2, %v1185_v52 }
 0x499   : > { %v1300_v57 = vpop.f32.mrb[8].mxu0 }
 0x49a   : > { %v968_v58 = vadd.f32 %v1300_v57, %v872_v55  ;;  %v962_v59 = vpop.f32.mrb[9].mxu0 }
 0x49b   : > { %v963_v60 = vadd.f32 %v962_v59, %v867_v56 }
 0x49c   : > { %1422 = vtanh.f32 %v968_v58 }
 0x49d   : > { %1424 = vtanh.f32 %v963_v60  ;;  %v1303_v62 = vpop.f32.mrb[10].mxu0 }
 0x49e   : > { %v978_v0 = vadd.f32 %v1303_v62, %v882_v61  ;;  %v972_v1 = vpop.f32.mrb[11].mxu0 }
 0x49f   : > { %v973_v2 = vadd.f32 %v972_v1, %v877_v63 }
 0x4a0   : > { %1426 = vtanh.f32 %v978_v0 }
 0x4a1   : > { %1428 = vtanh.f32 %v973_v2 }
 0x4a6   : > { %v1423_v3 = vpop.eup %1422 }
 0x4a7   : > { %v1425_v4 = vpop.eup %1424  ;;  %v986_v5 = vadd.f32 %v1423_v3, %v1734_v20  ;;  %v998_v20 = vsub.s32 0, %v997_v18 }
 0x4a8   : > { %v985_v6 = vadd.f32 %v1425_v4, %v1737_v21  ;;  %v1078_v21 = vmul.f32 %v1076_v19, %v1074_v16 }
 0x4a9   : > { %v999_v24 = vrot.slane %v994_v23, %v998_v20 }
 0x4aa   : > { %v1427_v8 = vpop.eup %1426  ;;  %v1348_v9 = vpack.c.bf16 %v986_v5, %v985_v6 }
 0x4ab   : > { %v1429_v10 = vpop.eup %1428  ;;  %v988_v11 = vadd.f32 %v1427_v8, %v1742_v25  ;;  %v1081_v25 = vmul.f32 %v1079_v22, %v1078_v21 }
 0x4ac   : > { %1349 = vmatpush3.bf16.msra.mxu1 %v1348_v9  ;;  %v987_v12 = vadd.f32 %v1429_v10, %v1745_v26 }
 0x4ad   : > { %1350 = vmatprep.subr.bf16.mxu1 %v1495_v53 }
 0x4ae   : > { %v1351_v13 = vpack.c.bf16 %v988_v11, %v987_v12 }
 0x4b0   : > { %1352 = vmatpush3.bf16.msra.mxu1 %v1351_v13 }
 0x4b3   : > { %1313 = vmatmul.mubr.msk.f32.vlgmr.msra.gmra.mrb[8].mxu1 %vm488_vm2, %v989_v14 }
 0x586   : > { %v1069_v26 = vpop.f32.mrb[8].mxu1 }
 0x587   : > { %v1070_v27 = vadd.f32 %v1069_v26, %v999_v24  ;;  %v1314_v28 = vpop.f32.mrb[9].mxu1 }
 0x589   : > { %v1082_v29 = vmul.f32 %v1081_v25, %v1070_v27 }
 0x58b   : > { %1083 = vst [vmem:[%s324_s17] sm:$0x1] %v1082_v29 }
 0x58c   : > { %1443 = shalt.err (!%p1440_p3)
}
 0x58d   : > { %s1444_s29 = scalar_lea.hbm %s1792_s24, 16  ;;  %s1448_s15 = scalar_lea.hbm %s1843_s9, 32 }
 0x58e   : > { %p1445_p4 = scmp.ne.s32.totalorder %s1792_s24, %s1444_s29  ;;  %p1449_p9 = scmp.lt.u32.totalorder %s1792_s24, %s1843_s9 }
 0x58f   : > { %p1450_p10 = scmp.lt.u32.totalorder %s1448_s15, %s1444_s29  ;;  %p1452_p12 = scmp.lt.u32.totalorder %s1444_s29, %s1792_s24 }
 0x590   : > { %p1446_p7 = pnand %p1445_p4, %p1590_p5 }
 0x591   : > { %p1451_p11 = por %p1450_p10, %p1449_p9 }
 0x592   : > { %p1447_p8 = pneg %p1446_p7 }
 0x593   : > { %p1453_p13 = por %p1452_p12, %p1451_p11 }
 0x595   : > { %p1454_p0 = pnand %p1453_p13, %p1447_p8 }
 0x597   : > { %1457 = shalt.err (!%p1454_p0)
}
 0x598   : > { %1353 = dma.vmem_to_hbm [thread:$0]  (%p1590_p5), %s1794_s18, 16, %s1792_s24, %s1085_s25  }
 0x599 PF: > { %p1359_p1 = scmp.ge.s32.totalorder %s1492_s14, 2  ;;  %s1109_s23 = sand.u32 1, %s1480_s11  }
 0x59a   : > { %s1110_s26 = scalar_lea.sflag [#allocation4], %s1109_s23 }
 0x59b   : > { %p1356_p2 = pnand %p1359_p1, %p1594_p6 }
 0x59d   : > { %1475 = dma.done.wait (!%p1356_p2), %s1110_s26, 16  }
 0x59e   : > { %1477 = vsyncadd (!%p1356_p2), %s1110_s26, 4294967280  ;;  %p21_p3 = scmp.ge.s32.totalorder %s1577_s16, 4   ;;  %s1846_s11 = smov %s1484_s12 }
 0x59f   : > { %s1847_s12 = smov %s1488_s13  ;;  %s1848_s13 = smov %s1588_s19 }
 0x5a0   : > { %s1849_s14 = smov %s1577_s16  ;;  %23 = sbr.rel (!%p21_p3) target bundleno = 6 (0x6), region = 95 }
 0x5a7   :  { %1114 = vsyncpa [#allocation4], 1 }
 0x5a8   :  { %1116 = vsyncpa [#allocation4 + $0x1], 1 }

</bundles_post_ra>
